<compile_context>
chip_gen: v7x
topology: tpu7x:2x2x1
jax: 0.10.0
libtpu: 0.0.40
codegen_flags: <defaults>
</compile_context>

<pallas_src>
import functools

import jax
import jax.numpy as jnp
from jax import lax
from jax.experimental import pallas as pl
from jax.experimental.pallas import tpu as pltpu


# ----------------------------------------------------------------------------
# Pallas kernels
# ----------------------------------------------------------------------------
def _conv_mm_kernel(col_ref, w_ref, b_ref, o_ref):
    """o = relu(col @ w + b).  col:(TM,K) bf16, w:(K,O) bf16, b:(1,O) f32."""
    acc = jnp.dot(col_ref[...], w_ref[...], preferred_element_type=jnp.float32)
    acc = jnp.maximum(acc + b_ref[...], 0.0)
    o_ref[...] = acc.astype(o_ref.dtype)


def conv_matmul(col, w, b, *, max_tile_m=512):
    """Tiled (over M) matmul+bias+relu for the im2col'd convolutions."""
    m, k = col.shape
    o = w.shape[1]
    # Full-array block when small (always a legal block shape); otherwise a
    # 512-row tile (multiple of 16 for bf16 sublane tiling, ~85% HBM roofline).
    tile_m = m if m <= max_tile_m else max_tile_m
    grid_m = pl.cdiv(m, tile_m)
    return pl.pallas_call(
        _conv_mm_kernel,
        out_shape=jax.ShapeDtypeStruct((m, o), jnp.bfloat16),
        grid=(grid_m,),
        in_specs=[
            pl.BlockSpec((tile_m, k), lambda i: (i, 0)),
            pl.BlockSpec((k, o), lambda i: (0, 0)),
            pl.BlockSpec((1, o), lambda i: (0, 0)),
        ],
        out_specs=pl.BlockSpec((tile_m, o), lambda i: (i, 0)),
        compiler_params=pltpu.CompilerParams(
            dimension_semantics=("parallel",)),
    )(col, w, b)


def _tail_kernel(p3_ref, w3_ref, b3_ref, wf_ref, bf_ref, wh_ref, bh_ref,
                 out_ref, *, tile_n, p, actions):
    """Fused tail:  conv3(+relu) -> flatten -> fc(+relu) -> policy/value head.

    p3:(TN*P, C3*9) bf16 conv3 im2col, w3:(C3*9,64) bf16, b3:(1,64) f32
    wf:(64*P, H) bf16 (columns permuted to (H3,W3,C) order), bf:(1,H) f32
    wh:(H, A+1) bf16  -- policy columns 0..A-1, value column A
    out:(TN, A+1) f32 -- log_softmax(policy) in cols 0..A-1, raw value in col A
    """
    # conv3 + relu
    h3 = jnp.dot(p3_ref[...], w3_ref[...], preferred_element_type=jnp.float32)
    h3 = jnp.maximum(h3 + b3_ref[...], 0.0)                    # (TN*P, 64) f32
    # flatten in (oh3, ow3, c) order; fc weight columns are pre-permuted to match.
    # (For the 1x1 conv3 output of the demo shapes this reshape is a no-op.)
    feat = h3.reshape(tile_n, p * h3.shape[-1]).astype(jnp.bfloat16)
    # fc + the model-level relu  (== relu(fc(x)))
    f = jnp.dot(feat, wf_ref[...], preferred_element_type=jnp.float32)
    f = jnp.maximum(f + bf_ref[...], 0.0)                      # (TN, H) f32
    # policy and value heads in ONE matmul (value = extra output column).
    z = jnp.dot(f.astype(jnp.bfloat16), wh_ref[...],
                preferred_element_type=jnp.float32) + bh_ref[...]   # (TN, A+1)
    col = lax.broadcasted_iota(jnp.int32, z.shape, 1)
    is_policy = col < actions
    zm = jnp.where(is_policy, z, -1e30)       # mask value column out of softmax
    mx = jnp.max(zm, axis=-1, keepdims=True)
    lse = jnp.log(jnp.sum(jnp.exp(zm - mx), axis=-1, keepdims=True)) + mx
    out_ref[...] = jnp.where(is_policy, z - lse, z)


def pallas_tail(p3, w3, b3, wf, bf, wh, bh, *, n, p, actions, max_tile_n=256):
    k3 = p3.shape[1]
    c3 = w3.shape[1]
    d, hidden = wf.shape
    tile_n = n if n <= max_tile_n else max_tile_n
    grid_n = pl.cdiv(n, tile_n)
    kern = functools.partial(_tail_kernel, tile_n=tile_n, p=p, actions=actions)
    return pl.pallas_call(
        kern,
        out_shape=jax.ShapeDtypeStruct((n, actions + 1), jnp.float32),
        grid=(grid_n,),
        in_specs=[
            pl.BlockSpec((tile_n * p, k3), lambda i: (i, 0)),
            pl.BlockSpec((k3, c3), lambda i: (0, 0)),
            pl.BlockSpec((1, c3), lambda i: (0, 0)),
            pl.BlockSpec((d, hidden), lambda i: (0, 0)),
            pl.BlockSpec((1, hidden), lambda i: (0, 0)),
            pl.BlockSpec((hidden, actions + 1), lambda i: (0, 0)),
            pl.BlockSpec((1, actions + 1), lambda i: (0, 0)),
        ],
        out_specs=pl.BlockSpec((tile_n, actions + 1), lambda i: (i, 0)),
        compiler_params=pltpu.CompilerParams(
            dimension_semantics=("parallel",)),
    )(p3, w3, b3, wf, bf, wh, bh)


# ----------------------------------------------------------------------------
# Glue: NHWC patch extraction (single fused XLA op, no Python slice loops)
# ----------------------------------------------------------------------------
def nhwc_patches(x, kh, kw, stride):
    """(N,H,W,C) -> (N, OH, OW, C*KH*KW); patch channels ordered (C, KH, KW),
    matching PyTorch's OIHW weight flattening."""
    return lax.conv_general_dilated_patches(
        x, (kh, kw), (stride, stride), 'VALID',
        dimension_numbers=('NHWC', 'HWIO', 'NHWC'))


# ----------------------------------------------------------------------------
# Parameters: PyTorch-layout init + one-time prep into kernel layouts
# ----------------------------------------------------------------------------
def init_params(key, input_dims, actions, hidden_units):
    c_in, h, w = input_dims
    ks = jax.random.split(key, 12)

    def lin_init(kw_, kb_, fan_in, shape_w, shape_b):
        s = 1.0 / jnp.sqrt(fan_in)
        return (jax.random.uniform(kw_, shape_w, jnp.float32, -s, s),
                jax.random.uniform(kb_, shape_b, jnp.float32, -s, s))

    p = {}
    p["conv1_w"], p["conv1_b"] = lin_init(ks[0], ks[1], c_in * 8 * 8, (32, c_in, 8, 8), (32,))
    p["conv2_w"], p["conv2_b"] = lin_init(ks[2], ks[3], 32 * 4 * 4, (64, 32, 4, 4), (64,))
    p["conv3_w"], p["conv3_b"] = lin_init(ks[4], ks[5], 64 * 3 * 3, (64, 64, 3, 3), (64,))

    def out_sz(s, k, st):
        return (s - k) // st + 1

    oh = out_sz(out_sz(out_sz(h, 8, 4), 4, 2), 3, 1)
    ow = out_sz(out_sz(out_sz(w, 8, 4), 4, 2), 3, 1)
    d = 64 * oh * ow

    p["fc_w"], p["fc_b"] = lin_init(ks[6], ks[7], d, (hidden_units, d), (hidden_units,))
    p["fcp_w"], p["fcp_b"] = lin_init(ks[8], ks[9], hidden_units, (actions, hidden_units), (actions,))
    p["fcv_w"], p["fcv_b"] = lin_init(ks[10], ks[11], hidden_units, (1, hidden_units), (1,))
    return p


def prepare_params(params):
    """One-time layout prep (done OUTSIDE the jitted forward):
       - flatten conv weights (O,C,KH,KW) -> (C*KH*KW, O), cast to bf16
       - fold the 1/255 input scale into conv1's weights
       - permute fc columns from (C3,H3,W3) to (H3,W3,C3) order (NHWC flatten)
       - concatenate policy & value heads into one (H, A+1) matrix
       - biases stay f32 (elementwise done in f32)."""
    def conv_mat(w):
        return w.reshape(w.shape[0], -1).T

    prep = {}
    prep["w1"] = (conv_mat(params["conv1_w"]) / 255.0).astype(jnp.bfloat16)
    prep["b1"] = params["conv1_b"].reshape(1, -1).astype(jnp.float32)
    prep["w2"] = conv_mat(params["conv2_w"]).astype(jnp.bfloat16)
    prep["b2"] = params["conv2_b"].reshape(1, -1).astype(jnp.float32)
    prep["w3"] = conv_mat(params["conv3_w"]).astype(jnp.bfloat16)
    prep["b3"] = params["conv3_b"].reshape(1, -1).astype(jnp.float32)

    fw = params["fc_w"]                       # (hidden, D), D ordered (C3,H3,W3)
    hidden, d = fw.shape
    c3 = params["conv3_w"].shape[0]
    pp = d // c3
    fw = fw.reshape(hidden, c3, pp).transpose(0, 2, 1).reshape(hidden, d)
    prep["wf"] = fw.T.astype(jnp.bfloat16)    # (D, hidden), ordered (H3,W3,C3)
    prep["bf"] = params["fc_b"].reshape(1, -1).astype(jnp.float32)

    wh = jnp.concatenate([params["fcp_w"], params["fcv_w"]], axis=0)  # (A+1, H)
    bh = jnp.concatenate([params["fcp_b"], params["fcv_b"]], axis=0)  # (A+1,)
    prep["wh"] = wh.T.astype(jnp.bfloat16)    # (H, A+1)
    prep["bh"] = bh.reshape(1, -1).astype(jnp.float32)
    return prep


# ----------------------------------------------------------------------------
# Forward
# ----------------------------------------------------------------------------
def actor_critic_forward(x_u8, prep):
    """x_u8: (N, C, H, W) uint8.  Returns {'log_policy': (N,A), 'ext_value': (N,)}."""
    n = x_u8.shape[0]
    actions = prep["wh"].shape[1] - 1

    # prep_for_model: uint8 -> float in [0,1].  uint8 values are exact in bf16;
    # the 1/255 scale is folded into conv1's weights (no extra HBM pass).
    x = jnp.transpose(x_u8, (0, 2, 3, 1)).astype(jnp.bfloat16)   # NHWC

    # conv1 + relu
    p1 = nhwc_patches(x, 8, 8, 4)
    _, oh1, ow1, k1 = p1.shape
    y1 = conv_matmul(p1.reshape(n * oh1 * ow1, k1), prep["w1"], prep["b1"])
    y1 = y1.reshape(n, oh1, ow1, prep["w1"].shape[1])

    # conv2 + relu
    p2 = nhwc_patches(y1, 4, 4, 2)
    _, oh2, ow2, k2 = p2.shape
    y2 = conv_matmul(p2.reshape(n * oh2 * ow2, k2), prep["w2"], prep["b2"])
    y2 = y2.reshape(n, oh2, ow2, prep["w2"].shape[1])

    # fused tail: conv3 + relu + flatten + fc + relu + policy/value heads
    p3 = nhwc_patches(y2, 3, 3, 1)
    _, oh3, ow3, k3 = p3.shape
    pp = oh3 * ow3
    out = pallas_tail(p3.reshape(n * pp, k3), prep["w3"], prep["b3"],
                      prep["wf"], prep["bf"], prep["wh"], prep["bh"],
                      n=n, p=pp, actions=actions)
    return {"log_policy": out[:, :actions], "ext_value": out[:, actions]}


# ----------------------------------------------------------------------------
if __name__ == "__main__":
    # small shapes: batch=2, 4 stacked frames, 36x36 spatial, hidden=64, 6 actions
    input_dims = (4, 36, 36)
    actions = 6
    hidden_units = 64

    key = jax.random.PRNGKey(0)
    k_params, k_x = jax.random.split(key)
    params = init_params(k_params, input_dims, actions, hidden_units)
    prep = prepare_params(params)   # one-time layout prep, outside the jit

    x = jax.random.randint(k_x, (2, *input_dims), 0, 256, dtype=jnp.int32).astype(jnp.uint8)

    fwd = jax.jit(actor_critic_forward)
    out = fwd(x, prep)
    jax.block_until_ready(out)

    assert out["log_policy"].shape == (2, actions)
    assert out["ext_value"].shape == (2,)
    # log_softmax rows must sum to ~1 in probability space
    assert jnp.allclose(jnp.exp(out["log_policy"]).sum(axis=1), 1.0, atol=1e-4)
    assert bool(jnp.all(jnp.isfinite(out["log_policy"]))) and bool(jnp.all(jnp.isfinite(out["ext_value"])))

    print("KERNEL_OK")
</pallas_src>

<mosaic_0001>
module attributes {stable_mosaic.version = 11 : i64} {
  func.func @_conv_mm_kernel(%arg0: i32, %arg1: memref<128x256xbf16, #tpu.memory_space<vmem>>, %arg2: memref<256x32xbf16, #tpu.memory_space<vmem>>, %arg3: memref<1x32xf32, #tpu.memory_space<vmem>>, %arg4: memref<128x32xbf16, #tpu.memory_space<vmem>>) attributes {dimension_semantics = [#tpu.dimension_semantics<parallel>], iteration_bounds = array<i64: 1>, scalar_prefetch = 0 : i64, scratch_operands = 0 : i64, tpu.core_type = #tpu.core_type<tc>, window_params = [{transform_indices = @transform_0, window_bounds = array<i64: 128, 256>}, {pipeline_mode = #tpu.pipeline_mode<synchronous>, transform_indices = @transform_1, window_bounds = array<i64: 256, 32>}, {pipeline_mode = #tpu.pipeline_mode<synchronous>, transform_indices = @transform_2, window_bounds = array<i64: 1, 32>}, {transform_indices = @transform_3, window_bounds = array<i64: 128, 32>}]} {
    %c0 = arith.constant 0 : index
    %c0_0 = arith.constant 0 : index
    %0 = vector.load %arg1[%c0, %c0_0] : memref<128x256xbf16, #tpu.memory_space<vmem>>, vector<128x256xbf16>
    %c0_1 = arith.constant 0 : index
    %c0_2 = arith.constant 0 : index
    %1 = vector.load %arg2[%c0_1, %c0_2] : memref<256x32xbf16, #tpu.memory_space<vmem>>, vector<256x32xbf16>
    %cst = arith.constant dense<0.000000e+00> : vector<128x32xf32>
    %2 = tpu.matmul %0, %1, %cst {dimension_numbers = #tpu.dot_dimension_numbers<[1], [0], [0], [1], [0, 0, 1, 1], [], []>} : vector<128x256xbf16>, vector<256x32xbf16>, vector<128x32xf32> -> vector<128x32xf32>
    %c0_3 = arith.constant 0 : index
    %c0_4 = arith.constant 0 : index
    %3 = vector.load %arg3[%c0_3, %c0_4] : memref<1x32xf32, #tpu.memory_space<vmem>>, vector<1x32xf32>
    %4 = vector.broadcast %3 : vector<1x32xf32> to vector<128x32xf32>
    %5 = arith.addf %2, %4 : vector<128x32xf32>
    %cst_5 = arith.constant 0.000000e+00 : f32
    %6 = vector.broadcast %cst_5 : f32 to vector<128x32xf32>
    %7 = arith.maximumf %5, %6 : vector<128x32xf32>
    %8 = arith.truncf %7 : vector<128x32xf32> to vector<128x32xbf16>
    %c0_6 = arith.constant 0 : index
    %c0_7 = arith.constant 0 : index
    %9 = vector.load %arg4[%c0_6, %c0_7] : memref<128x32xbf16, #tpu.memory_space<vmem>>, vector<128x32xbf16>
    tpu.vector_store %arg4[%c0_6, %c0_7], %8 {strides = array<i32>} : memref<128x32xbf16, #tpu.memory_space<vmem>>, vector<128x32xbf16>,
    return
  }
  func.func @transform_0(%arg0: i32) -> (i32, i32) {
    %c0_i32 = arith.constant 0 : i32
    %c0_i32_0 = arith.constant 0 : i32
    return %arg0, %c0_i32 : i32, i32
  }
  func.func @transform_1(%arg0: i32) -> (i32, i32) {
    %c0_i32 = arith.constant 0 : i32
    %c0_i32_0 = arith.constant 0 : i32
    %c0_i32_1 = arith.constant 0 : i32
    return %c0_i32, %c0_i32_0 : i32, i32
  }
  func.func @transform_2(%arg0: i32) -> (i32, i32) {
    %c0_i32 = arith.constant 0 : i32
    %c0_i32_0 = arith.constant 0 : i32
    %c0_i32_1 = arith.constant 0 : i32
    return %c0_i32, %c0_i32_0 : i32, i32
  }
  func.func @transform_3(%arg0: i32) -> (i32, i32) {
    %c0_i32 = arith.constant 0 : i32
    %c0_i32_0 = arith.constant 0 : i32
    return %arg0, %c0_i32 : i32, i32
  }
}

module attributes {stable_mosaic.version = 11 : i64} {
  func.func @_conv_mm_kernel(%arg0: i32, %arg1: memref<18x512xbf16, #tpu.memory_space<vmem>>, %arg2: memref<512x64xbf16, #tpu.memory_space<vmem>>, %arg3: memref<1x64xf32, #tpu.memory_space<vmem>>, %arg4: memref<18x64xbf16, #tpu.memory_space<vmem>>) attributes {dimension_semantics = [#tpu.dimension_semantics<parallel>], iteration_bounds = array<i64: 1>, scalar_prefetch = 0 : i64, scratch_operands = 0 : i64, tpu.core_type = #tpu.core_type<tc>, window_params = [{transform_indices = @transform_0, window_bounds = array<i64: 18, 512>}, {pipeline_mode = #tpu.pipeline_mode<synchronous>, transform_indices = @transform_1, window_bounds = array<i64: 512, 64>}, {pipeline_mode = #tpu.pipeline_mode<synchronous>, transform_indices = @transform_2, window_bounds = array<i64: 1, 64>}, {transform_indices = @transform_3, window_bounds = array<i64: 18, 64>}]} {
    %c0 = arith.constant 0 : index
    %c0_0 = arith.constant 0 : index
    %0 = vector.load %arg1[%c0, %c0_0] : memref<18x512xbf16, #tpu.memory_space<vmem>>, vector<18x512xbf16>
    %c0_1 = arith.constant 0 : index
    %c0_2 = arith.constant 0 : index
    %1 = vector.load %arg2[%c0_1, %c0_2] : memref<512x64xbf16, #tpu.memory_space<vmem>>, vector<512x64xbf16>
    %cst = arith.constant dense<0.000000e+00> : vector<18x64xf32>
    %2 = tpu.matmul %0, %1, %cst {dimension_numbers = #tpu.dot_dimension_numbers<[1], [0], [0], [1], [0, 0, 1, 1], [], []>} : vector<18x512xbf16>, vector<512x64xbf16>, vector<18x64xf32> -> vector<18x64xf32>
    %c0_3 = arith.constant 0 : index
    %c0_4 = arith.constant 0 : index
    %3 = vector.load %arg3[%c0_3, %c0_4] : memref<1x64xf32, #tpu.memory_space<vmem>>, vector<1x64xf32>
    %4 = vector.broadcast %3 : vector<1x64xf32> to vector<18x64xf32>
    %5 = arith.addf %2, %4 : vector<18x64xf32>
    %cst_5 = arith.constant 0.000000e+00 : f32
    %6 = vector.broadcast %cst_5 : f32 to vector<18x64xf32>
    %7 = arith.maximumf %5, %6 : vector<18x64xf32>
    %8 = arith.truncf %7 : vector<18x64xf32> to vector<18x64xbf16>
    %c0_6 = arith.constant 0 : index
    %c0_7 = arith.constant 0 : index
    %9 = vector.load %arg4[%c0_6, %c0_7] : memref<18x64xbf16, #tpu.memory_space<vmem>>, vector<18x64xbf16>
    tpu.vector_store %arg4[%c0_6, %c0_7], %8 {strides = array<i32>} : memref<18x64xbf16, #tpu.memory_space<vmem>>, vector<18x64xbf16>,
    return
  }
  func.func @transform_0(%arg0: i32) -> (i32, i32) {
    %c0_i32 = arith.constant 0 : i32
    %c0_i32_0 = arith.constant 0 : i32
    return %arg0, %c0_i32 : i32, i32
  }
  func.func @transform_1(%arg0: i32) -> (i32, i32) {
    %c0_i32 = arith.constant 0 : i32
    %c0_i32_0 = arith.constant 0 : i32
    %c0_i32_1 = arith.constant 0 : i32
    return %c0_i32, %c0_i32_0 : i32, i32
  }
  func.func @transform_2(%arg0: i32) -> (i32, i32) {
    %c0_i32 = arith.constant 0 : i32
    %c0_i32_0 = arith.constant 0 : i32
    %c0_i32_1 = arith.constant 0 : i32
    return %c0_i32, %c0_i32_0 : i32, i32
  }
  func.func @transform_3(%arg0: i32) -> (i32, i32) {
    %c0_i32 = arith.constant 0 : i32
    %c0_i32_0 = arith.constant 0 : i32
    return %arg0, %c0_i32 : i32, i32
  }
}

module attributes {stable_mosaic.version = 11 : i64} {
  func.func @_tail_kernel(%arg0: i32, %arg1: memref<2x576xbf16, #tpu.memory_space<vmem>>, %arg2: memref<576x64xbf16, #tpu.memory_space<vmem>>, %arg3: memref<1x64xf32, #tpu.memory_space<vmem>>, %arg4: memref<64x64xbf16, #tpu.memory_space<vmem>>, %arg5: memref<1x64xf32, #tpu.memory_space<vmem>>, %arg6: memref<64x7xbf16, #tpu.memory_space<vmem>>, %arg7: memref<1x7xf32, #tpu.memory_space<vmem>>, %arg8: memref<2x7xf32, #tpu.memory_space<vmem>>) attributes {dimension_semantics = [#tpu.dimension_semantics<parallel>], iteration_bounds = array<i64: 1>, scalar_prefetch = 0 : i64, scratch_operands = 0 : i64, tpu.core_type = #tpu.core_type<tc>, window_params = [{transform_indices = @transform_0, window_bounds = array<i64: 2, 576>}, {pipeline_mode = #tpu.pipeline_mode<synchronous>, transform_indices = @transform_1, window_bounds = array<i64: 576, 64>}, {pipeline_mode = #tpu.pipeline_mode<synchronous>, transform_indices = @transform_2, window_bounds = array<i64: 1, 64>}, {pipeline_mode = #tpu.pipeline_mode<synchronous>, transform_indices = @transform_3, window_bounds = array<i64: 64, 64>}, {pipeline_mode = #tpu.pipeline_mode<synchronous>, transform_indices = @transform_4, window_bounds = array<i64: 1, 64>}, {pipeline_mode = #tpu.pipeline_mode<synchronous>, transform_indices = @transform_5, window_bounds = array<i64: 64, 7>}, {pipeline_mode = #tpu.pipeline_mode<synchronous>, transform_indices = @transform_6, window_bounds = array<i64: 1, 7>}, {transform_indices = @transform_7, window_bounds = array<i64: 2, 7>}]} {
    %c0 = arith.constant 0 : index
    %c0_0 = arith.constant 0 : index
    %0 = vector.load %arg1[%c0, %c0_0] : memref<2x576xbf16, #tpu.memory_space<vmem>>, vector<2x576xbf16>
    %c0_1 = arith.constant 0 : index
    %c0_2 = arith.constant 0 : index
    %1 = vector.load %arg2[%c0_1, %c0_2] : memref<576x64xbf16, #tpu.memory_space<vmem>>, vector<576x64xbf16>
    %cst = arith.constant dense<0.000000e+00> : vector<2x64xf32>
    %2 = tpu.matmul %0, %1, %cst {dimension_numbers = #tpu.dot_dimension_numbers<[1], [0], [0], [1], [0, 0, 1, 1], [], []>} : vector<2x576xbf16>, vector<576x64xbf16>, vector<2x64xf32> -> vector<2x64xf32>
    %c0_3 = arith.constant 0 : index
    %c0_4 = arith.constant 0 : index
    %3 = vector.load %arg3[%c0_3, %c0_4] : memref<1x64xf32, #tpu.memory_space<vmem>>, vector<1x64xf32>
    %4 = vector.broadcast %3 : vector<1x64xf32> to vector<2x64xf32>
    %5 = arith.addf %2, %4 : vector<2x64xf32>
    %cst_5 = arith.constant 0.000000e+00 : f32
    %6 = vector.broadcast %cst_5 : f32 to vector<2x64xf32>
    %7 = arith.maximumf %5, %6 : vector<2x64xf32>
    %8 = arith.truncf %7 : vector<2x64xf32> to vector<2x64xbf16>
    %c0_6 = arith.constant 0 : index
    %c0_7 = arith.constant 0 : index
    %9 = vector.load %arg4[%c0_6, %c0_7] : memref<64x64xbf16, #tpu.memory_space<vmem>>, vector<64x64xbf16>
    %cst_8 = arith.constant dense<0.000000e+00> : vector<2x64xf32>
    %10 = tpu.matmul %8, %9, %cst_8 {dimension_numbers = #tpu.dot_dimension_numbers<[1], [0], [0], [1], [0, 0, 1, 1], [], []>} : vector<2x64xbf16>, vector<64x64xbf16>, vector<2x64xf32> -> vector<2x64xf32>
    %c0_9 = arith.constant 0 : index
    %c0_10 = arith.constant 0 : index
    %11 = vector.load %arg5[%c0_9, %c0_10] : memref<1x64xf32, #tpu.memory_space<vmem>>, vector<1x64xf32>
    %12 = vector.broadcast %11 : vector<1x64xf32> to vector<2x64xf32>
    %13 = arith.addf %10, %12 : vector<2x64xf32>
    %cst_11 = arith.constant 0.000000e+00 : f32
    %14 = vector.broadcast %cst_11 : f32 to vector<2x64xf32>
    %15 = arith.maximumf %13, %14 : vector<2x64xf32>
    %16 = arith.truncf %15 : vector<2x64xf32> to vector<2x64xbf16>
    %c0_12 = arith.constant 0 : index
    %c0_13 = arith.constant 0 : index
    %17 = vector.load %arg6[%c0_12, %c0_13] : memref<64x7xbf16, #tpu.memory_space<vmem>>, vector<64x7xbf16>
    %cst_14 = arith.constant dense<0.000000e+00> : vector<2x7xf32>
    %18 = tpu.matmul %16, %17, %cst_14 {dimension_numbers = #tpu.dot_dimension_numbers<[1], [0], [0], [1], [0, 0, 1, 1], [], []>} : vector<2x64xbf16>, vector<64x7xbf16>, vector<2x7xf32> -> vector<2x7xf32>
    %c0_15 = arith.constant 0 : index
    %c0_16 = arith.constant 0 : index
    %19 = vector.load %arg7[%c0_15, %c0_16] : memref<1x7xf32, #tpu.memory_space<vmem>>, vector<1x7xf32>
    %20 = vector.broadcast %19 : vector<1x7xf32> to vector<2x7xf32>
    %21 = arith.addf %18, %20 : vector<2x7xf32>
    %22 = tpu.iota {dimensions = array<i32: 1>} : vector<2x7xi32>
    %c6_i32 = arith.constant 6 : i32
    %23 = vector.broadcast %c6_i32 : i32 to vector<2x7xi32>
    %24 = arith.cmpi slt, %22, %23 : vector<2x7xi32>
    %cst_17 = arith.constant -1.000000e+30 : f32
    %25 = vector.broadcast %cst_17 : f32 to vector<2x7xf32>
    %26 = arith.select %24, %21, %25 : vector<2x7xi1>, vector<2x7xf32>
    %cst_18 = arith.constant dense<0xFF800000> : vector<2xf32>
    %27 = vector.multi_reduction <maximumf>, %26, %cst_18 [1] : vector<2x7xf32> to vector<2xf32>
    %28 = vector.shape_cast %27 : vector<2xf32> to vector<2x1xf32>
    %29 = vector.broadcast %28 : vector<2x1xf32> to vector<2x7xf32>
    %30 = arith.subf %26, %29 : vector<2x7xf32>
    %31 = math.exp %30 : vector<2x7xf32>
    %cst_19 = arith.constant dense<0.000000e+00> : vector<2xf32>
    %32 = vector.multi_reduction <add>, %31, %cst_19 [1] : vector<2x7xf32> to vector<2xf32>
    %33 = vector.shape_cast %32 : vector<2xf32> to vector<2x1xf32>
    %34 = math.log %33 : vector<2x1xf32>
    %35 = arith.addf %34, %28 : vector<2x1xf32>
    %36 = vector.broadcast %35 : vector<2x1xf32> to vector<2x7xf32>
    %37 = arith.subf %21, %36 : vector<2x7xf32>
    %38 = arith.select %24, %37, %21 : vector<2x7xi1>, vector<2x7xf32>
    %c0_20 = arith.constant 0 : index
    %c0_21 = arith.constant 0 : index
    %39 = vector.load %arg8[%c0_20, %c0_21] : memref<2x7xf32, #tpu.memory_space<vmem>>, vector<2x7xf32>
    tpu.vector_store %arg8[%c0_20, %c0_21], %38 {strides = array<i32>} : memref<2x7xf32, #tpu.memory_space<vmem>>, vector<2x7xf32>,
    return
  }
  func.func @transform_0(%arg0: i32) -> (i32, i32) {
    %c0_i32 = arith.constant 0 : i32
    %c0_i32_0 = arith.constant 0 : i32
    return %arg0, %c0_i32 : i32, i32
  }
  func.func @transform_1(%arg0: i32) -> (i32, i32) {
    %c0_i32 = arith.constant 0 : i32
    %c0_i32_0 = arith.constant 0 : i32
    %c0_i32_1 = arith.constant 0 : i32
    return %c0_i32, %c0_i32_0 : i32, i32
  }
  func.func @transform_2(%arg0: i32) -> (i32, i32) {
    %c0_i32 = arith.constant 0 : i32
    %c0_i32_0 = arith.constant 0 : i32
    %c0_i32_1 = arith.constant 0 : i32
    return %c0_i32, %c0_i32_0 : i32, i32
  }
  func.func @transform_3(%arg0: i32) -> (i32, i32) {
    %c0_i32 = arith.constant 0 : i32
    %c0_i32_0 = arith.constant 0 : i32
    %c0_i32_1 = arith.constant 0 : i32
    return %c0_i32, %c0_i32_0 : i32, i32
  }
  func.func @transform_4(%arg0: i32) -> (i32, i32) {
    %c0_i32 = arith.constant 0 : i32
    %c0_i32_0 = arith.constant 0 : i32
    %c0_i32_1 = arith.constant 0 : i32
    return %c0_i32, %c0_i32_0 : i32, i32
  }
  func.func @transform_5(%arg0: i32) -> (i32, i32) {
    %c0_i32 = arith.constant 0 : i32
    %c0_i32_0 = arith.constant 0 : i32
    %c0_i32_1 = arith.constant 0 : i32
    return %c0_i32, %c0_i32_0 : i32, i32
  }
  func.func @transform_6(%arg0: i32) -> (i32, i32) {
    %c0_i32 = arith.constant 0 : i32
    %c0_i32_0 = arith.constant 0 : i32
    %c0_i32_1 = arith.constant 0 : i32
    return %c0_i32, %c0_i32_0 : i32, i32
  }
  func.func @transform_7(%arg0: i32) -> (i32, i32) {
    %c0_i32 = arith.constant 0 : i32
    %c0_i32_0 = arith.constant 0 : i32
    return %arg0, %c0_i32 : i32, i32
  }
}

</mosaic_0001>

<bundles_post_ra>
// kernel: actor_critic_forward.3
= control target key start
LH: loop header
LB: loop body
LE: loop exit
PB: predicated region body
PF: predicated region fallthrough
CT: control target
= control target key end

     0   :  { %vm423_vm0 = vcmask 257024   ;;  %s830_s1 = inlined_call_operand.vmem [shape: bf16[256,32], index: 1, kind: input, shape index: {}]   ;;  %s831_s0 = inlined_call_operand.vmem [shape: bf16[128,256], index: 0, kind: input, shape index: {}]   ;;  %s832_s2 = inlined_call_operand.vmem [shape: f32[1,32], index: 2, kind: input, shape index: {}]   ;;  %s833_s3 = inlined_call_operand.vmem [shape: bf16[128,32], index: 3, kind: output, shape index: {}]  }
   0x1   :  { %v589_v0 = vld [vmem:[%s830_s1 + $0x40] sm:$0xff]   ;;  %v591_v2 = vld [vmem:[%s830_s1 + $0x48] sm:$0xff]   ;;  %v593_v4 = vld [vmem:[%s830_s1 + $0x50] sm:$0xff]  }
   0x2   :  { %v590_v1 = vld [vmem:[%s830_s1] sm:$0xff]   ;;  %509 = vmatprep.subr.bf16.mxu0 %v589_v0  ;;  %573 = vmatprep.subr.bf16.mxu1 %v589_v0  ;;  %v592_v3 = vld [vmem:[%s830_s1 + $0x8] sm:$0xff]   ;;  %v594_v5 = vld [vmem:[%s830_s1 + $0x10] sm:$0xff]  }
   0x3   :  { %510 = vmatpush3.bf16.msra.mxu0 %v590_v1  ;;  %581 = vmatpush3.bf16.msra.mxu1 %v590_v1  ;;  %v595_v6 = vld [vmem:[%s830_s1 + $0x58] sm:$0xff]   ;;  %v597_v8 = vld [vmem:[%s830_s1 + $0x60] sm:$0xff]   ;;  %v599_v10 = vld [vmem:[%s830_s1 + $0x68] sm:$0xff]  }
   0x4   :  { %511 = vmatprep.subr.bf16.mxu0 %v591_v2  ;;  %574 = vmatprep.subr.bf16.mxu1 %v591_v2  ;;  %v596_v7 = vld [vmem:[%s830_s1 + $0x18] sm:$0xff]   ;;  %v598_v9 = vld [vmem:[%s830_s1 + $0x20] sm:$0xff]   ;;  %v600_v13 = vld [vmem:[%s830_s1 + $0x28] sm:$0xff]  }
   0x5   :  { %v607_v11 = vld [vmem:[%s831_s0 + $0x4] ss:$8 sps:$4 sm:$0xff]   ;;  %v601_v14 = vld [vmem:[%s830_s1 + $0x70] sm:$0xff]   ;;  %v603_v16 = vld [vmem:[%s830_s1 + $0x78] sm:$0xff]  }
   0x6   :  { %v610_v12 = vld [vmem:[%s831_s0 + $0x44] ss:$8 sps:$4 sm:$0xff]   ;;  %278 = vmatprep.mubr.bf16.mxu0 %v607_v11  ;;  %v602_v15 = vld [vmem:[%s830_s1 + $0x30] sm:$0xff]   ;;  %v604_v17 = vld [vmem:[%s830_s1 + $0x38] sm:$0xff]  }
   0x7   :  { %512 = vmatpush3.bf16.msra.mxu0 %v592_v3  ;;  %582 = vmatpush3.bf16.msra.mxu1 %v592_v3  ;;  %v605_v18 = vld [vmem:[%s831_s0] ss:$8 sps:$4 sm:$0xff]   ;;  %v611_v20 = vld [vmem:[%s831_s0 + $0x14] ss:$8 sps:$4 sm:$0xff]   ;;  %v615_v22 = vld [vmem:[%s831_s0 + $0x10] ss:$8 sps:$4 sm:$0xff]  }
   0x8   :  { %513 = vmatprep.subr.bf16.mxu0 %v593_v4  ;;  %575 = vmatprep.subr.bf16.mxu1 %v593_v4  ;;  %v608_v19 = vld [vmem:[%s831_s0 + $0x40] ss:$8 sps:$4 sm:$0xff]   ;;  %v613_v21 = vld [vmem:[%s831_s0 + $0x54] ss:$8 sps:$4 sm:$0xff]   ;;  %v616_v23 = vld [vmem:[%s831_s0 + $0x50] ss:$8 sps:$4 sm:$0xff]  }
   0x9   :  { %310 = vmatprep.mubr.bf16.mxu1 %v610_v12  ;;  %v617_v24 = vld [vmem:[%s831_s0 + $0x24] ss:$8 sps:$4 sm:$0xff]   ;;  %v621_v26 = vld [vmem:[%s831_s0 + $0x20] ss:$8 sps:$4 sm:$0xff]   ;;  %v623_v28 = vld [vmem:[%s831_s0 + $0x34] ss:$8 sps:$4 sm:$0xff]  }
   0xa   :  { %v619_v25 = vld [vmem:[%s831_s0 + $0x64] ss:$8 sps:$4 sm:$0xff]   ;;  %v622_v27 = vld [vmem:[%s831_s0 + $0x60] ss:$8 sps:$4 sm:$0xff]   ;;  %v625_v29 = vld [vmem:[%s831_s0 + $0x74] ss:$8 sps:$4 sm:$0xff]  }
   0xb   :  { %514 = vmatpush3.bf16.msra.mxu0 %v594_v5  ;;  %583 = vmatpush3.bf16.msra.mxu1 %v594_v5  ;;  %v627_v30 = vld [vmem:[%s831_s0 + $0x30] ss:$8 sps:$4 sm:$0xff]   ;;  %v748_v34 = vld [vmem:[%s832_s2] ss:$0 sm:$0xff] }
   0xc   :  { %515 = vmatprep.subr.bf16.mxu0 %v595_v6  ;;  %576 = vmatprep.subr.bf16.mxu1 %v595_v6  ;;  %v628_v31 = vld [vmem:[%s831_s0 + $0x70] ss:$8 sps:$4 sm:$0xff]  }
   0xf   :  { %516 = vmatpush3.bf16.msra.mxu0 %v596_v7  ;;  %584 = vmatpush3.bf16.msra.mxu1 %v596_v7 }
  0x10   :  { %517 = vmatprep.subr.bf16.mxu0 %v597_v8  ;;  %577 = vmatprep.subr.bf16.mxu1 %v597_v8 }
  0x13   :  { %518 = vmatpush3.bf16.msra.mxu0 %v598_v9  ;;  %585 = vmatpush3.bf16.msra.mxu1 %v598_v9 }
  0x14   :  { %519 = vmatprep.subr.bf16.mxu0 %v599_v10  ;;  %578 = vmatprep.subr.bf16.mxu1 %v599_v10 }
  0x17   :  { %520 = vmatpush3.bf16.msra.mxu0 %v600_v13  ;;  %586 = vmatpush3.bf16.msra.mxu1 %v600_v13 }
  0x18   :  { %521 = vmatprep.subr.bf16.mxu0 %v601_v14  ;;  %579 = vmatprep.subr.bf16.mxu1 %v601_v14 }
  0x1b   :  { %522 = vmatpush3.bf16.msra.mxu0 %v602_v15  ;;  %587 = vmatpush3.bf16.msra.mxu1 %v602_v15 }
  0x1c   :  { %523 = vmatprep.subr.bf16.mxu0 %v603_v16  ;;  %580 = vmatprep.subr.bf16.mxu1 %v603_v16 }
  0x1f   :  { %524 = vmatpush3.bf16.msra.mxu0 %v604_v17  ;;  %588 = vmatpush3.bf16.msra.mxu1 %v604_v17 }
  0x22   :  { %279 = vmatmul.mubr.bf16.vlgmr.msra.gmra.mrb[0].mxu0 %v605_v18  ;;  %311 = vmatmul.mubr.bf16.vlgmr.msra.gmra.mrb[0].mxu1 %v608_v19 }
  0x23   :  { %286 = vmatprep.mubr.bf16.mxu0 %v611_v20  ;;  %318 = vmatprep.mubr.bf16.mxu1 %v613_v21 }
  0x2a   :  { %287 = vmatmul.mubr.bf16.gmra.mrb[4].mxu0 %v615_v22  ;;  %319 = vmatmul.mubr.bf16.gmra.mrb[4].mxu1 %v616_v23 }
  0x2b   :  { %294 = vmatprep.mubr.bf16.mxu0 %v617_v24  ;;  %326 = vmatprep.mubr.bf16.mxu1 %v619_v25 }
  0x32   :  { %295 = vmatmul.mubr.bf16.gmra.mrb[8].mxu0 %v621_v26  ;;  %327 = vmatmul.mubr.bf16.gmra.mrb[8].mxu1 %v622_v27 }
  0x33   :  { %302 = vmatprep.mubr.bf16.mxu0 %v623_v28  ;;  %334 = vmatprep.mubr.bf16.mxu1 %v625_v29 }
  0x3a   :  { %303 = vmatmul.mubr.bf16.gmra.mrb[12].mxu0 %v627_v30  ;;  %335 = vmatmul.mubr.bf16.gmra.mrb[12].mxu1 %v628_v31 }
  0xf5   :  { %v525_v32 = vpop.f32.mrb[0].mxu0  ;;  %v549_v33 = vpop.f32.mrb[0].mxu1 }
  0xf6   :  { %v526_v35 = vpop.f32.mrb[1].mxu0  ;;  %v550_v36 = vpop.f32.mrb[1].mxu1 }
  0xf7   :  { %v527_v37 = vadd.f32 %v526_v35, %v525_v32  ;;  %v551_v38 = vadd.f32 %v550_v36, %v549_v33  ;;  %v528_v39 = vpop.f32.mrb[2].mxu0  ;;  %v552_v40 = vpop.f32.mrb[2].mxu1 }
  0xf8   :  { %v529_v41 = vpop.f32.mrb[3].mxu0  ;;  %v553_v42 = vpop.f32.mrb[3].mxu1 }
  0xf9   :  { %v281_v43 = vadd.f32 %v527_v37, %v748_v34  ;;  %v313_v44 = vadd.f32 %v551_v38, %v748_v34  ;;  %v530_v45 = vadd.f32 %v529_v41, %v528_v39  ;;  %v554_v46 = vadd.f32 %v553_v42, %v552_v40 }
  0xfb   :  { %v343_v47 = vmax.f32 %v281_v43, 0.0  ;;  %v351_v48 = vmax.f32 %v313_v44, 0.0  ;;  %v284_v49 = vadd.f32 %v530_v45, %v748_v34  ;;  %v316_v50 = vadd.f32 %v554_v46, %v748_v34 }
  0xfd   :  { %v493_v51 = vpack.c.bf16 %v343_v47, %v343_v47  ;;  %v501_v52 = vpack.c.bf16 %v351_v48, %v351_v48  ;;  %v344_v53 = vmax.f32 %v284_v49, 0.0  ;;  %v352_v54 = vmax.f32 %v316_v50, 0.0  ;;  %v531_v55 = vpop.f32.mrb[4].mxu0  ;;  %v555_v56 = vpop.f32.mrb[4].mxu1 }
  0xfe   :  { %v532_v57 = vpop.f32.mrb[5].mxu0  ;;  %v556_v58 = vpop.f32.mrb[5].mxu1 }
  0xff   :  { %424 = vst.msk [vmem:[%s833_s3] sm:$0xf] %vm423_vm0, %v493_v51  ;;  %432 = vst.msk [vmem:[%s833_s3 + $0x20] sm:$0xf] %vm423_vm0, %v501_v52  ;;  %v494_v59 = vpack.c.bf16 %v344_v53, %v344_v53  ;;  %v502_v60 = vpack.c.bf16 %v352_v54, %v352_v54  ;;  %v533_v61 = vadd.f32 %v532_v57, %v531_v55  ;;  %v534_v63 = vpop.f32.mrb[6].mxu0  ;;  %v558_v0 = vpop.f32.mrb[6].mxu1 }
 0x100   :  { %v557_v62 = vadd.f32 %v556_v58, %v555_v56  ;;  %v535_v1 = vpop.f32.mrb[7].mxu0  ;;  %v559_v2 = vpop.f32.mrb[7].mxu1 }
 0x101   :  { %425 = vst.msk [vmem:[%s833_s3 + $0x4] sm:$0xf] %vm423_vm0, %v494_v59  ;;  %433 = vst.msk [vmem:[%s833_s3 + $0x24] sm:$0xf] %vm423_vm0, %v502_v60  ;;  %v289_v3 = vadd.f32 %v533_v61, %v748_v34  ;;  %v536_v5 = vadd.f32 %v535_v1, %v534_v63  ;;  %v560_v6 = vadd.f32 %v559_v2, %v558_v0 }
 0x102   :  { %v321_v4 = vadd.f32 %v557_v62, %v748_v34 }
 0x103   :  { %v345_v7 = vmax.f32 %v289_v3, 0.0  ;;  %v292_v9 = vadd.f32 %v536_v5, %v748_v34  ;;  %v324_v10 = vadd.f32 %v560_v6, %v748_v34 }
 0x104   :  { %v353_v8 = vmax.f32 %v321_v4, 0.0 }
 0x105   :  { %v495_v11 = vpack.c.bf16 %v345_v7, %v345_v7  ;;  %v346_v13 = vmax.f32 %v292_v9, 0.0  ;;  %v354_v14 = vmax.f32 %v324_v10, 0.0  ;;  %v537_v15 = vpop.f32.mrb[8].mxu0  ;;  %v561_v16 = vpop.f32.mrb[8].mxu1 }
 0x106   :  { %v503_v12 = vpack.c.bf16 %v353_v8, %v353_v8  ;;  %v538_v17 = vpop.f32.mrb[9].mxu0  ;;  %v562_v18 = vpop.f32.mrb[9].mxu1 }
 0x107   :  { %426 = vst.msk [vmem:[%s833_s3 + $0x8] sm:$0xf] %vm423_vm0, %v495_v11  ;;  %v496_v19 = vpack.c.bf16 %v346_v13, %v346_v13  ;;  %v504_v20 = vpack.c.bf16 %v354_v14, %v354_v14  ;;  %v539_v21 = vadd.f32 %v538_v17, %v537_v15  ;;  %v563_v22 = vadd.f32 %v562_v18, %v561_v16  ;;  %v540_v23 = vpop.f32.mrb[10].mxu0  ;;  %v564_v24 = vpop.f32.mrb[10].mxu1 }
 0x108   :  { %434 = vst.msk [vmem:[%s833_s3 + $0x28] sm:$0xf] %vm423_vm0, %v503_v12  ;;  %v541_v25 = vpop.f32.mrb[11].mxu0  ;;  %v565_v26 = vpop.f32.mrb[11].mxu1 }
 0x109   :  { %427 = vst.msk [vmem:[%s833_s3 + $0xc] sm:$0xf] %vm423_vm0, %v496_v19  ;;  %435 = vst.msk [vmem:[%s833_s3 + $0x2c] sm:$0xf] %vm423_vm0, %v504_v20  ;;  %v297_v27 = vadd.f32 %v539_v21, %v748_v34  ;;  %v329_v28 = vadd.f32 %v563_v22, %v748_v34  ;;  %v542_v29 = vadd.f32 %v541_v25, %v540_v23 }
 0x10a   :  { %v566_v30 = vadd.f32 %v565_v26, %v564_v24 }
 0x10b   :  { %v347_v31 = vmax.f32 %v297_v27, 0.0  ;;  %v355_v32 = vmax.f32 %v329_v28, 0.0  ;;  %v300_v33 = vadd.f32 %v542_v29, %v748_v34 }
 0x10c   :  { %v332_v35 = vadd.f32 %v566_v30, %v748_v34 }
 0x10d   :  { %v497_v36 = vpack.c.bf16 %v347_v31, %v347_v31  ;;  %v505_v37 = vpack.c.bf16 %v355_v32, %v355_v32  ;;  %v348_v38 = vmax.f32 %v300_v33, 0.0  ;;  %v543_v40 = vpop.f32.mrb[12].mxu0  ;;  %v567_v41 = vpop.f32.mrb[12].mxu1 }
 0x10e   :  { %v356_v39 = vmax.f32 %v332_v35, 0.0  ;;  %v544_v42 = vpop.f32.mrb[13].mxu0  ;;  %v568_v43 = vpop.f32.mrb[13].mxu1 }
 0x10f   :  { %428 = vst.msk [vmem:[%s833_s3 + $0x10] sm:$0xf] %vm423_vm0, %v497_v36  ;;  %436 = vst.msk [vmem:[%s833_s3 + $0x30] sm:$0xf] %vm423_vm0, %v505_v37  ;;  %v498_v44 = vpack.c.bf16 %v348_v38, %v348_v38  ;;  %v545_v46 = vadd.f32 %v544_v42, %v543_v40  ;;  %v569_v47 = vadd.f32 %v568_v43, %v567_v41  ;;  %v546_v48 = vpop.f32.mrb[14].mxu0  ;;  %v570_v49 = vpop.f32.mrb[14].mxu1 }
 0x110   :  { %v506_v45 = vpack.c.bf16 %v356_v39, %v356_v39  ;;  %v547_v50 = vpop.f32.mrb[15].mxu0  ;;  %v571_v51 = vpop.f32.mrb[15].mxu1 }
 0x111   :  { %429 = vst.msk [vmem:[%s833_s3 + $0x14] sm:$0xf] %vm423_vm0, %v498_v44  ;;  %v305_v52 = vadd.f32 %v545_v46, %v748_v34  ;;  %v337_v53 = vadd.f32 %v569_v47, %v748_v34  ;;  %v548_v54 = vadd.f32 %v547_v50, %v546_v48  ;;  %v572_v55 = vadd.f32 %v571_v51, %v570_v49 }
 0x112   :  { %437 = vst.msk [vmem:[%s833_s3 + $0x34] sm:$0xf] %vm423_vm0, %v506_v45 }
 0x113   :  { %v349_v56 = vmax.f32 %v305_v52, 0.0  ;;  %v357_v57 = vmax.f32 %v337_v53, 0.0  ;;  %v308_v58 = vadd.f32 %v548_v54, %v748_v34  ;;  %v340_v59 = vadd.f32 %v572_v55, %v748_v34 }
 0x115   :  { %v499_v60 = vpack.c.bf16 %v349_v56, %v349_v56  ;;  %v507_v61 = vpack.c.bf16 %v357_v57, %v357_v57  ;;  %v350_v62 = vmax.f32 %v308_v58, 0.0  ;;  %v358_v63 = vmax.f32 %v340_v59, 0.0 }
 0x117   :  { %430 = vst.msk [vmem:[%s833_s3 + $0x18] sm:$0xf] %vm423_vm0, %v499_v60  ;;  %438 = vst.msk [vmem:[%s833_s3 + $0x38] sm:$0xf] %vm423_vm0, %v507_v61  ;;  %v500_v0 = vpack.c.bf16 %v350_v62, %v350_v62  ;;  %v508_v1 = vpack.c.bf16 %v358_v63, %v358_v63 }
 0x119   :  { %431 = vst.msk [vmem:[%s833_s3 + $0x1c] sm:$0xf] %vm423_vm0, %v500_v0  ;;  %439 = vst.msk [vmem:[%s833_s3 + $0x3c] sm:$0xf] %vm423_vm0, %v508_v1 }

// kernel: actor_critic_forward.4
= control target key start
LH: loop header
LB: loop body
LE: loop exit
PB: predicated region body
PF: predicated region fallthrough
CT: control target
= control target key end

     0   :  { %vm430_vm0 = vcmask 519168   ;;  %vm433_vm1 = vcmask 516096   ;;  %s730_s1 = inlined_call_operand.vmem [shape: bf16[512,64], index: 1, kind: input, shape index: {}]   ;;  %s731_s0 = inlined_call_operand.vmem [shape: bf16[18,512], index: 0, kind: input, shape index: {}]   ;;  %s732_s2 = inlined_call_operand.vmem [shape: f32[1,64], index: 2, kind: input, shape index: {}]   ;;  %s733_s3 = inlined_call_operand.vmem [shape: bf16[18,64], index: 3, kind: output, shape index: {}]  }
   0x1   :  { %v542_v0 = vld [vmem:[%s730_s1 + $0x40] sm:$0xff]   ;;  %v546_v4 = vld [vmem:[%s730_s1 + $0x48] sm:$0xff]   ;;  %v550_v8 = vld [vmem:[%s730_s1 + $0x50] sm:$0xff]  }
   0x2   :  { %v543_v1 = vld [vmem:[%s730_s1 + $0xc0] sm:$0xff]   ;;  %486 = vmatprep.subr.bf16.mxu0 %v542_v0  ;;  %v547_v5 = vld [vmem:[%s730_s1 + $0xc8] sm:$0xff]   ;;  %v551_v9 = vld [vmem:[%s730_s1 + $0xd0] sm:$0xff]  }
   0x3   :  { %v544_v2 = vld [vmem:[%s730_s1] sm:$0xff]   ;;  %514 = vmatprep.subr.bf16.mxu1 %v543_v1  ;;  %v548_v6 = vld [vmem:[%s730_s1 + $0x8] sm:$0xff]   ;;  %v552_v10 = vld [vmem:[%s730_s1 + $0x10] sm:$0xff]  }
   0x4   :  { %v545_v3 = vld [vmem:[%s730_s1 + $0x80] sm:$0xff]   ;;  %487 = vmatpush3.bf16.msra.mxu0 %v544_v2  ;;  %v549_v7 = vld [vmem:[%s730_s1 + $0x88] sm:$0xff]   ;;  %v553_v11 = vld [vmem:[%s730_s1 + $0x90] sm:$0xff]  }
   0x5   :  { %515 = vmatpush3.bf16.msra.mxu1 %v545_v3  ;;  %488 = vmatprep.subr.bf16.mxu0 %v546_v4  ;;  %v554_v12 = vld [vmem:[%s730_s1 + $0x58] sm:$0xff]   ;;  %v558_v16 = vld [vmem:[%s730_s1 + $0x60] sm:$0xff]   ;;  %v562_v20 = vld [vmem:[%s730_s1 + $0x68] sm:$0xff]  }
   0x6   :  { %516 = vmatprep.subr.bf16.mxu1 %v547_v5  ;;  %v555_v13 = vld [vmem:[%s730_s1 + $0xd8] sm:$0xff]   ;;  %v559_v17 = vld [vmem:[%s730_s1 + $0xe0] sm:$0xff]   ;;  %v563_v21 = vld [vmem:[%s730_s1 + $0xe8] sm:$0xff]  }
   0x7   :  { %v556_v14 = vld [vmem:[%s730_s1 + $0x18] sm:$0xff]   ;;  %v560_v18 = vld [vmem:[%s730_s1 + $0x20] sm:$0xff]   ;;  %v564_v22 = vld [vmem:[%s730_s1 + $0x28] sm:$0xff]  }
   0x8   :  { %489 = vmatpush3.bf16.msra.mxu0 %v548_v6  ;;  %v557_v15 = vld [vmem:[%s730_s1 + $0x98] sm:$0xff]   ;;  %v561_v19 = vld [vmem:[%s730_s1 + $0xa0] sm:$0xff]   ;;  %v565_v23 = vld [vmem:[%s730_s1 + $0xa8] sm:$0xff]  }
   0x9   :  { %517 = vmatpush3.bf16.msra.mxu1 %v549_v7  ;;  %490 = vmatprep.subr.bf16.mxu0 %v550_v8  ;;  %v566_v24 = vld [vmem:[%s730_s1 + $0x70] sm:$0xff]   ;;  %v570_v28 = vld [vmem:[%s730_s1 + $0x78] sm:$0xff]   ;;  %v19_v36 = vld [vmem:[%s731_s0 + $0x20] sm:$0x11] }
   0xa   :  { %518 = vmatprep.subr.bf16.mxu1 %v551_v9  ;;  %v567_v25 = vld [vmem:[%s730_s1 + $0xf0] sm:$0xff]   ;;  %v571_v29 = vld [vmem:[%s730_s1 + $0xf8] sm:$0xff]   ;;  %v445_v37 = vcombine.high %v19_v36, %v19_v36  ;;  %v20_v38 = vld [vmem:[%s731_s0 + $0x28] sm:$0x11]  ;;  %v444_v40 = vcombine.low %v19_v36, %v19_v36 }
   0xb   :  { %v568_v26 = vld [vmem:[%s730_s1 + $0x30] sm:$0xff]   ;;  %v572_v30 = vld [vmem:[%s730_s1 + $0x38] sm:$0xff]   ;;  %v447_v39 = vcombine.high %v20_v38, %v20_v38  ;;  %v446_v41 = vcombine.low %v20_v38, %v20_v38  ;;  %v439_v44 = vld [vmem:[%s732_s2] ss:$0 sm:$0xff] }
   0xc   :  { %491 = vmatpush3.bf16.msra.mxu0 %v552_v10  ;;  %v569_v27 = vld [vmem:[%s730_s1 + $0xb0] sm:$0xff]   ;;  %v573_v31 = vld [vmem:[%s730_s1 + $0xb8] sm:$0xff]  }
   0xd   :  { %519 = vmatpush3.bf16.msra.mxu1 %v553_v11  ;;  %492 = vmatprep.subr.bf16.mxu0 %v554_v12  ;;  %v574_v32 = vld [vmem:[%s731_s0] ss:$16 sps:$4 sm:$0xff]   ;;  %v576_v33 = vld [vmem:[%s731_s0 + $0x4] ss:$16 sps:$4 sm:$0xff]   ;;  %v577_v34 = vld [vmem:[%s731_s0 + $0x8] ss:$16 sps:$4 sm:$0xff]  }
   0xe   :  { %520 = vmatprep.subr.bf16.mxu1 %v555_v13  ;;  %v579_v35 = vld [vmem:[%s731_s0 + $0xc] ss:$16 sps:$4 sm:$0xff]   ;;  %350 = vmatprep.mubr.bf16.mxu0 %v576_v33 }
   0xf   :  { %398 = vmatprep.mubr.bf16.mxu1 %v579_v35 }
  0x10   :  { %493 = vmatpush3.bf16.msra.mxu0 %v556_v14 }
  0x11   :  { %521 = vmatpush3.bf16.msra.mxu1 %v557_v15  ;;  %494 = vmatprep.subr.bf16.mxu0 %v558_v16 }
  0x12   :  { %522 = vmatprep.subr.bf16.mxu1 %v559_v17 }
  0x14   :  { %495 = vmatpush3.bf16.msra.mxu0 %v560_v18 }
  0x15   :  { %523 = vmatpush3.bf16.msra.mxu1 %v561_v19  ;;  %496 = vmatprep.subr.bf16.mxu0 %v562_v20 }
  0x16   :  { %524 = vmatprep.subr.bf16.mxu1 %v563_v21 }
  0x18   :  { %497 = vmatpush3.bf16.msra.mxu0 %v564_v22 }
  0x19   :  { %525 = vmatpush3.bf16.msra.mxu1 %v565_v23  ;;  %498 = vmatprep.subr.bf16.mxu0 %v566_v24 }
  0x1a   :  { %526 = vmatprep.subr.bf16.mxu1 %v567_v25 }
  0x1c   :  { %499 = vmatpush3.bf16.msra.mxu0 %v568_v26 }
  0x1d   :  { %527 = vmatpush3.bf16.msra.mxu1 %v569_v27  ;;  %500 = vmatprep.subr.bf16.mxu0 %v570_v28 }
  0x1e   :  { %528 = vmatprep.subr.bf16.mxu1 %v571_v29 }
  0x20   :  { %501 = vmatpush3.bf16.msra.mxu0 %v572_v30 }
  0x21   :  { %529 = vmatpush3.bf16.msra.mxu1 %v573_v31 }
  0x23   :  { %351 = vmatmul.mubr.bf16.vlgmr.msra.gmra.mrb[0].mxu0 %v574_v32 }
  0x24   :  { %399 = vmatmul.mubr.bf16.vlgmr.msra.gmra.mrb[0].mxu1 %v577_v34  ;;  %358 = vmatprep.mubr.bf16.mxu0 %v445_v37 }
  0x25   :  { %406 = vmatprep.mubr.bf16.mxu1 %v447_v39 }
  0x2b   :  { %359 = vmatmul.mubr.bf16.gmra.mrb[4].mxu0 %v444_v40 }
  0x2c   :  { %407 = vmatmul.mubr.bf16.gmra.mrb[4].mxu1 %v446_v41 }
  0xf6   :  { %v502_v42 = vpop.f32.mrb[0].mxu0 }
  0xf7   :  { %v530_v43 = vpop.f32.mrb[0].mxu1  ;;  %v503_v45 = vpop.f32.mrb[1].mxu0 }
  0xf8   :  { %v504_v46 = vadd.f32 %v503_v45, %v502_v42  ;;  %v531_v47 = vpop.f32.mrb[1].mxu1  ;;  %v505_v48 = vpop.f32.mrb[2].mxu0 }
  0xf9   :  { %v532_v49 = vadd.f32 %v531_v47, %v530_v43  ;;  %v533_v50 = vpop.f32.mrb[2].mxu1  ;;  %v506_v51 = vpop.f32.mrb[3].mxu0 }
  0xfa   :  { %v353_v52 = vadd.f32 %v504_v46, %v439_v44  ;;  %v507_v53 = vadd.f32 %v506_v51, %v505_v48  ;;  %v534_v54 = vpop.f32.mrb[3].mxu1 }
  0xfb   :  { %v535_v55 = vadd.f32 %v534_v54, %v533_v50 }
  0xfc   :  { %v401_v56 = vadd.f32 %v532_v49, %v353_v52  ;;  %v356_v57 = vadd.f32 %v507_v53, %v439_v44 }
  0xfe   :  { %v414_v58 = vmax.f32 %v401_v56, 0.0  ;;  %v404_v59 = vadd.f32 %v535_v55, %v356_v57  ;;  %v508_v60 = vpop.f32.mrb[4].mxu0 }
  0xff   :  { %v536_v61 = vpop.f32.mrb[4].mxu1  ;;  %v509_v62 = vpop.f32.mrb[5].mxu0 }
 0x100   :  { %v483_v63 = vpack.c.bf16 %v414_v58, %v414_v58  ;;  %v415_v0 = vmax.f32 %v404_v59, 0.0  ;;  %v510_v1 = vadd.f32 %v509_v62, %v508_v60  ;;  %v537_v2 = vpop.f32.mrb[5].mxu1  ;;  %v511_v3 = vpop.f32.mrb[6].mxu0 }
 0x101   :  { %v538_v4 = vadd.f32 %v537_v2, %v536_v61  ;;  %v539_v5 = vpop.f32.mrb[6].mxu1  ;;  %v512_v6 = vpop.f32.mrb[7].mxu0 }
 0x102   :  { %431 = vst.msk [vmem:[%s733_s3] sm:$0xf] %vm430_vm0, %v483_v63  ;;  %v484_v7 = vpack.c.bf16 %v415_v0, %v415_v0  ;;  %v361_v8 = vadd.f32 %v510_v1, %v439_v44  ;;  %v540_v9 = vpop.f32.mrb[7].mxu1 }
 0x104   :  { %432 = vst.msk [vmem:[%s733_s3 + $0x4] sm:$0xf] %vm430_vm0, %v484_v7  ;;  %v409_v10 = vadd.f32 %v538_v4, %v361_v8 }
 0x106   :  { %v416_v11 = vmax.f32 %v409_v10, 0.0 }
 0x108   :  { %v485_v12 = vpack.c.bf16 %v416_v11, %v416_v11 }
 0x10a   :  { %434 = vst.msk [vmem:[%s733_s3 + $0x8] sm:$0x1] %vm433_vm1, %v485_v12 }

// kernel: actor_critic_forward.5
= control target key start
LH: loop header
LB: loop body
LE: loop exit
PB: predicated region body
PF: predicated region fallthrough
CT: control target
= control target key end

     0   :  { %v880_v21 = vmov 1966171168   ;;  %v112_v23 = vlaneseq  ;;  %v881_v40 = vmov 0.0   ;;  %vm882_vm0 = vmmov 0   ;;  %s1098_s1 = inlined_call_operand.vmem [shape: bf16[576,64], index: 1, kind: input, shape index: {}]   ;;  %s1099_s0 = inlined_call_operand.vmem [shape: bf16[2,576], index: 0, kind: input, shape index: {}]   ;;  %s1100_s3 = inlined_call_operand.vmem [shape: bf16[64,64], index: 3, kind: input, shape index: {}]   ;;  %s1101_s5 = inlined_call_operand.vmem [shape: bf16[64,7], index: 5, kind: input, shape index: {}]   ;;  %s1102_s2 = inlined_call_operand.vmem [shape: f32[1,64], index: 2, kind: input, shape index: {}]   ;;  %s1103_s4 = inlined_call_operand.vmem [shape: f32[1,64], index: 4, kind: input, shape index: {}]   ;;  %s1104_s6 = inlined_call_operand.vmem [shape: f32[1,7], index: 6, kind: input, shape index: {}]   ;;  %s1105_s7 = inlined_call_operand.vmem [shape: f32[2,7], index: 7, kind: output, shape index: {}]  }
   0x1   :  { %v831_v0 = vld [vmem:[%s1098_s1 + $0x40] sm:$0xff]   ;;  %v835_v4 = vld [vmem:[%s1098_s1 + $0x48] sm:$0xff]   ;;  %v839_v8 = vld [vmem:[%s1098_s1 + $0x50] sm:$0xff]   ;;  %v110_v22 = vunpack.c.l.s4 %v880_v21  ;;  %vm367_vm1 = vcmask 523264   ;;  %vm663_vm3 = vcmask 50176  }
   0x2   :  { %v832_v1 = vld [vmem:[%s1098_s1] sm:$0xff]   ;;  %733 = vmatprep.subr.bf16.mxu0 %v831_v0  ;;  %v836_v5 = vld [vmem:[%s1098_s1 + $0x8] sm:$0xff]   ;;  %v840_v9 = vld [vmem:[%s1098_s1 + $0x10] sm:$0xff]   ;;  %v113_v29 = vshrl.u32 %v112_v23, 7 }
   0x3   :  { %v833_v2 = vld [vmem:[%s1098_s1 + $0xc0] sm:$0xff]   ;;  %734 = vmatpush3.bf16.msra.mxu0 %v832_v1  ;;  %v837_v6 = vld [vmem:[%s1098_s1 + $0xc8] sm:$0xff]   ;;  %v841_v10 = vld [vmem:[%s1098_s1 + $0xd0] sm:$0xff]   ;;  %v111_v28 = vunpack.c.0.s8 %v110_v22 }
   0x4   :  { %v834_v3 = vld [vmem:[%s1098_s1 + $0x80] sm:$0xff]   ;;  %755 = vmatprep.subr.bf16.mxu1 %v833_v2  ;;  %735 = vmatprep.subr.bf16.mxu0 %v835_v4  ;;  %v838_v7 = vld [vmem:[%s1098_s1 + $0x88] sm:$0xff]   ;;  %v842_v11 = vld [vmem:[%s1098_s1 + $0x90] sm:$0xff]  }
   0x5   :  { %756 = vmatpush3.bf16.msra.mxu1 %v834_v3  ;;  %v843_v12 = vld [vmem:[%s1098_s1 + $0x58] sm:$0xff]   ;;  %v847_v16 = vld [vmem:[%s1098_s1 + $0x60] sm:$0xff]   ;;  %v851_v20 = vld [vmem:[%s1098_s1 + $0x68] sm:$0xff]   ;;  %v114_v34 = vsub.s32 %v111_v28, %v113_v29 }
   0x6   :  { %757 = vmatprep.subr.bf16.mxu1 %v837_v6  ;;  %v844_v13 = vld [vmem:[%s1098_s1 + $0x18] sm:$0xff]   ;;  %v848_v17 = vld [vmem:[%s1098_s1 + $0x20] sm:$0xff]   ;;  %v852_v24 = vld [vmem:[%s1098_s1 + $0x28] sm:$0xff]  }
   0x7   :  { %736 = vmatpush3.bf16.msra.mxu0 %v836_v5  ;;  %v845_v14 = vld [vmem:[%s1098_s1 + $0xd8] sm:$0xff]   ;;  %v849_v18 = vld [vmem:[%s1098_s1 + $0xe0] sm:$0xff]   ;;  %v853_v25 = vld [vmem:[%s1098_s1 + $0xe8] sm:$0xff]  }
   0x8   :  { %737 = vmatprep.subr.bf16.mxu0 %v839_v8  ;;  %v846_v15 = vld [vmem:[%s1098_s1 + $0x98] sm:$0xff]   ;;  %v850_v19 = vld [vmem:[%s1098_s1 + $0xa0] sm:$0xff]   ;;  %v854_v26 = vld [vmem:[%s1098_s1 + $0xa8] sm:$0xff]  }
   0x9   :  { %758 = vmatpush3.bf16.msra.mxu1 %v838_v7  ;;  %v855_v27 = vld [vmem:[%s1098_s1 + $0x70] sm:$0xff]   ;;  %v859_v33 = vld [vmem:[%s1098_s1 + $0x78] sm:$0xff]   ;;  %v27_v37 = vld [vmem:[%s1099_s0] sm:$0x1f] }
   0xa   :  { %759 = vmatprep.subr.bf16.mxu1 %v841_v10  ;;  %v856_v30 = vld [vmem:[%s1098_s1 + $0x30] sm:$0xff]   ;;  %v860_v35 = vld [vmem:[%s1098_s1 + $0x38] sm:$0xff]   ;;  %v115_v38 = vrot.slane %v27_v37, %v114_v34  ;;  %v864_v44 = vld [vmem:[%s1098_s1 + $0x100] sm:$0xff]   ;;  %v108_v48 = vcombine.high %v27_v37, %v27_v37 }
   0xb   :  { %738 = vmatpush3.bf16.msra.mxu0 %v840_v9  ;;  %v857_v31 = vld [vmem:[%s1098_s1 + $0xf0] sm:$0xff]   ;;  %v861_v36 = vld [vmem:[%s1098_s1 + $0xf8] sm:$0xff]   ;;  %v865_v47 = vld [vmem:[%s1098_s1 + $0x108] sm:$0xff]  }
   0xc   :  { %739 = vmatprep.subr.bf16.mxu0 %v843_v12  ;;  %v858_v32 = vld [vmem:[%s1098_s1 + $0xb0] sm:$0xff]   ;;  %v863_v39 = vld [vmem:[%s1098_s1 + $0xb8] sm:$0xff]   ;;  %v123_v41 = vcombine.high %v115_v38, %v115_v38  ;;  %v130_v42 = vrot.slane %v115_v38, %v114_v34  ;;  %v122_v50 = vrot.slane %v108_v48, %v114_v34  ;;  %v868_v53 = vld [vmem:[%s1100_s3] sm:$0xff]  }
   0xd   :  { %760 = vmatpush3.bf16.msra.mxu1 %v842_v11  ;;  %v866_v49 = vld [vmem:[%s1098_s1 + $0x110] sm:$0xff]   ;;  %v867_v51 = vld [vmem:[%s1098_s1 + $0x118] sm:$0xff]   ;;  %v869_v54 = vld [vmem:[%s1100_s3 + $0x8] sm:$0xff]  }
   0xe   :  { %761 = vmatprep.subr.bf16.mxu1 %v845_v14  ;;  %v144_v43 = vrot.slane %v123_v41, %v114_v34  ;;  %v145_v45 = vcombine.high %v130_v42, %v130_v42  ;;  %v137_v52 = vrot.slane %v122_v50, %v114_v34  ;;  %v870_v55 = vld [vmem:[%s1100_s3 + $0x10] sm:$0xff]   ;;  %v871_v56 = vld [vmem:[%s1100_s3 + $0x18] sm:$0xff]   ;;  %v872_v57 = vld [vmem:[%s1101_s5] sm:$0xff]  }
   0xf   :  { %740 = vmatpush3.bf16.msra.mxu0 %v844_v13  ;;  %v873_v58 = vld [vmem:[%s1101_s5 + $0x8] sm:$0xff]   ;;  %v683_v60 = vld [vmem:[%s1102_s2] ss:$0 sm:$0xff] }
  0x10   :  { %741 = vmatprep.subr.bf16.mxu0 %v847_v16  ;;  %403 = vmatprep.mubr.bf16.mxu0 %v144_v43  ;;  %v146_v46 = vcombine.high %v144_v43, %v144_v43  ;;  %v875_v16 = vld [vmem:[%s1101_s5 + $0x18] sm:$0xff]  }
  0x11   :  { %762 = vmatpush3.bf16.msra.mxu1 %v846_v15  ;;  %v874_v15 = vld [vmem:[%s1101_s5 + $0x10] sm:$0xff]  }
  0x12   :  { %763 = vmatprep.subr.bf16.mxu1 %v849_v18  ;;  %443 = vmatprep.mubr.bf16.mxu1 %v146_v46 }
  0x13   :  { %742 = vmatpush3.bf16.msra.mxu0 %v848_v17  ;;  %v721_v17 = vld [vmem:[%s1103_s4] ss:$0 sm:$0xff] }
  0x14   :  { %743 = vmatprep.subr.bf16.mxu0 %v851_v20 }
  0x15   :  { %764 = vmatpush3.bf16.msra.mxu1 %v850_v19 }
  0x16   :  { %765 = vmatprep.subr.bf16.mxu1 %v853_v25 }
  0x17   :  { %744 = vmatpush3.bf16.msra.mxu0 %v852_v24 }
  0x18   :  { %745 = vmatprep.subr.bf16.mxu0 %v855_v27  ;;  %v727_v27 = vld [vmem:[%s1104_s6] ss:$0 sm:$0xff] }
  0x19   :  { %766 = vmatpush3.bf16.msra.mxu1 %v854_v26  ;;  %v660_v26 = vand.u32 127, %v112_v23 }
  0x1a   :  { %767 = vmatprep.subr.bf16.mxu1 %v857_v31 }
  0x1b   :  { %746 = vmatpush3.bf16.msra.mxu0 %v856_v30  ;;  %vm661_vm2 = vcmp.lt.s32.totalorder %v660_v26, 6 }
  0x1c   :  { %747 = vmatprep.subr.bf16.mxu0 %v859_v33 }
  0x1d   :  { %768 = vmatpush3.bf16.msra.mxu1 %v858_v32 }
  0x1e   :  { %769 = vmatprep.subr.bf16.mxu1 %v861_v36 }
  0x1f   :  { %748 = vmatpush3.bf16.msra.mxu0 %v860_v35 }
  0x20   :  { %792 = vmatprep.subr.bf16.mxu0 %v881_v40 }
  0x21   :  { %770 = vmatpush3.bf16.msra.mxu1 %v863_v39 }
  0x22   :  { %804 = vmatprep.subr.bf16.mxu1 %v881_v40  ;;  %404 = vmatmul.mubr.bf16.vlgmr.msra.gmra.mrb[0].mxu0 %v130_v42 }
  0x23   :  { %793 = vmatpush3.bf16.msra.mxu0 %v864_v44  ;;  %800 = vmatprep.mubr.msk.bf16.mxu0 %vm882_vm0, %v881_v40 }
  0x24   :  { %444 = vmatmul.mubr.bf16.vlgmr.msra.gmra.mrb[0].mxu1 %v145_v45  ;;  %794 = vmatprep.subr.bf16.mxu0 %v881_v40 }
  0x25   :  { %812 = vmatprep.mubr.msk.bf16.mxu1 %vm882_vm0, %v881_v40  ;;  %805 = vmatpush3.bf16.msra.mxu1 %v868_v53 }
  0x26   :  { %806 = vmatprep.subr.bf16.mxu1 %v881_v40 }
  0x27   :  { %795 = vmatpush3.bf16.msra.mxu0 %v865_v47 }
  0x28   :  { %796 = vmatprep.subr.bf16.mxu0 %v881_v40 }
  0x29   :  { %807 = vmatpush3.bf16.msra.mxu1 %v869_v54 }
  0x2a   :  { %808 = vmatprep.subr.bf16.mxu1 %v881_v40 }
  0x2b   :  { %797 = vmatpush3.bf16.msra.mxu0 %v866_v49 }
  0x2c   :  { %798 = vmatprep.subr.bf16.mxu0 %v881_v40 }
  0x2d   :  { %809 = vmatpush3.bf16.msra.mxu1 %v870_v55 }
  0x2e   :  { %810 = vmatprep.subr.bf16.mxu1 %v881_v40 }
  0x2f   :  { %799 = vmatpush3.bf16.msra.mxu0 %v867_v51 }
  0x30   :  { %816 = vmatprep.subr.bf16.mxu0 %v881_v40 }
  0x31   :  { %811 = vmatpush3.bf16.msra.mxu1 %v871_v56 }
  0x32   :  { %801 = vmatmul.mubr.msk.bf16.vlgmr.msra.gmra.mrb[4].mxu0 %vm367_vm1, %v137_v52 }
  0x33   :  { %824 = vmatprep.mubr.msk.bf16.mxu0 %vm882_vm0, %v881_v40  ;;  %817 = vmatpush3.bf16.msra.mxu0 %v872_v57 }
  0x34   :  { %818 = vmatprep.subr.bf16.mxu0 %v881_v40 }
  0x37   :  { %819 = vmatpush3.bf16.msra.mxu0 %v873_v58 }
  0x38   :  { %820 = vmatprep.subr.bf16.mxu0 %v881_v40 }
  0x3b   :  { %821 = vmatpush3.bf16.msra.mxu0 %v874_v15 }
  0x3c   :  { %822 = vmatprep.subr.bf16.mxu0 %v881_v40 }
  0x3f   :  { %823 = vmatpush3.bf16.msra.mxu0 %v875_v16 }
  0xf5   :  { %v749_v59 = vpop.f32.mrb[0].mxu0 }
  0xf6   :  { %v750_v61 = vpop.f32.mrb[1].mxu0 }
  0xf7   :  { %v751_v62 = vadd.f32 %v750_v61, %v749_v59  ;;  %v752_v63 = vpop.f32.mrb[2].mxu0  ;;  %v771_v0 = vpop.f32.mrb[0].mxu1 }
  0xf8   :  { %v753_v1 = vpop.f32.mrb[3].mxu0  ;;  %v772_v2 = vpop.f32.mrb[1].mxu1 }
  0xf9   :  { %v406_v3 = vadd.f32 %v751_v62, %v683_v60  ;;  %v773_v4 = vadd.f32 %v772_v2, %v771_v0  ;;  %v774_v5 = vpop.f32.mrb[2].mxu1 }
  0xfa   :  { %v775_v6 = vpop.f32.mrb[3].mxu1 }
  0xfb   :  { %v446_v7 = vadd.f32 %v773_v4, %v406_v3 }
 0x105   :  { %v485_v8 = vpop.f32.mrb[4].mxu0 }
 0x106   :  { %v486_v9 = vadd.f32 %v485_v8, %v446_v7  ;;  %v802_v10 = vpop.f32.mrb[5].mxu0 }
 0x107   :  { %v488_v11 = vpop.f32.mrb[6].mxu0 }
 0x108   :  { %v491_v12 = vmax.f32 %v486_v9, 0.0  ;;  %v803_v13 = vpop.f32.mrb[7].mxu0 }
 0x10a   :  { %v492_v14 = vpack.c.bf16 %v491_v12, %v491_v12 }
 0x10c   :  { %813 = vmatmul.mubr.msk.bf16.vlgmr.msra.gmra.mrb[4].mxu1 %vm367_vm1, %v492_v14 }
 0x1df   :  { %v569_v18 = vpop.f32.mrb[4].mxu1 }
 0x1e0   :  { %v570_v19 = vadd.f32 %v721_v17, %v569_v18  ;;  %v814_v20 = vpop.f32.mrb[5].mxu1 }
 0x1e1   :  { %v572_v21 = vpop.f32.mrb[6].mxu1 }
 0x1e2   :  { %v575_v22 = vmax.f32 %v570_v19, 0.0  ;;  %v815_v24 = vpop.f32.mrb[7].mxu1 }
 0x1e4   :  { %v576_v25 = vpack.c.bf16 %v575_v22, %v575_v22 }
 0x1e6   :  { %825 = vmatmul.mubr.msk.bf16.vlgmr.msra.gmra.mrb[8].mxu0 %vm367_vm1, %v576_v25 }
 0x2b9   :  { %v653_v28 = vpop.f32.mrb[8].mxu0 }
 0x2ba   :  { %v654_v29 = vadd.f32 %v727_v27, %v653_v28  ;;  %v826_v30 = vpop.f32.mrb[9].mxu0 }
 0x2bb   :  { %v656_v31 = vpop.f32.mrb[10].mxu0 }
 0x2bc   :  { %v827_v32 = vpop.f32.mrb[11].mxu0  ;;  %v662_v33 = vsel %vm661_vm2, %v654_v29, -1e+30 }
 0x2bd   :  { %v664_v34 = vsel %vm663_vm3, %v662_v33, -inf }
 0x2be   :  { %665 = vmax.xlane.f32.xlu0 %v664_v34 }
 0x34b   :  { %v666_v35 = vpop.xlane.xlu0 %665 }
 0x34c   :  { %v667_v36 = vsub.f32 %v662_v33, %v666_v35 }
 0x34e   :  { %v668_v37 = vmul.f32 1.442695, %v667_v36 }
 0x350   :  { %876 = vpow2.f32 %v668_v37 }
 0x35a   :  { %v877_v23 = vpop.eup %876 }
 0x35b   :  { %v670_v38 = vsel %vm663_vm3, %v877_v23, 0.0 }
 0x35c   :  { %671 = vadd.xlane.f32.xlu0 %v670_v38 }
 0x3e9   :  { %v672_v39 = vpop.xlane.xlu0 %671 }
 0x3ea   :  { %878 = vlog2.f32 %v672_v39 }
 0x3f4   :  { %v879_v40 = vpop.eup %878 }
 0x3f5   :  { %v674_v41 = vmul.f32 0.6931472, %v879_v40 }
 0x3f7   :  { %v675_v42 = vadd.f32 %v674_v41, %v666_v35 }
 0x3f9   :  { %v676_v43 = vsub.f32 %v654_v29, %v675_v42 }
 0x3fb   :  { %v677_v44 = vsel %vm661_vm2, %v676_v43, %v654_v29 }
 0x3fc   :  { %678 = vst.msk [vmem:[%s1105_s7] sm:$0x3] %vm663_vm3, %v677_v44 }

</bundles_post_ra>
